<compile_context>
chip_gen: v7x
topology: tpu7x:2x2x1
jax: 0.10.0
libtpu: 0.0.40
codegen_flags: <defaults>
</compile_context>

<pallas_src>
import functools
import math

import jax
import jax.numpy as jnp
from jax import lax
from jax.experimental import pallas as pl
from jax.experimental.pallas import tpu as pltpu


def _sigmoid_attention_kernel(x_q_ref, x_kv_ref, wq_ref, wkv_ref,
                              bq_ref, bkv_ref, o_ref,
                              q_scratch, acc_scratch, *kv_caches,
                              feature_dim, mxu_dtype, cache_kv):
    qi = pl.program_id(1)
    ki = pl.program_id(2)
    D = feature_dim
    # Fold both the 1/sqrt(D) attention scale and the extra 1/2 from
    # sigmoid(z) = 0.5*tanh(z/2) + 0.5 into the once-per-q-tile Q scaling.
    scale = 0.5 / math.sqrt(D)

    @pl.when(ki == 0)
    def _():
        # Q projection for this query tile, cached (bf16) across all KV steps.
        q = jnp.dot(x_q_ref[...].astype(mxu_dtype), wq_ref[...],
                    preferred_element_type=jnp.float32)
        q_scratch[...] = ((q + bq_ref[...]) * scale).astype(mxu_dtype)

    if cache_kv:
        k_cache, v_cache = kv_caches

        @pl.when(qi == 0)
        def _():
            # Fused K|V projection, computed once per (batch, kv-tile) and
            # stored in the per-batch VMEM cache for reuse by all q-tiles.
            kv = jnp.dot(x_kv_ref[...].astype(mxu_dtype), wkv_ref[...],
                         preferred_element_type=jnp.float32) + bkv_ref[...]
            k_cache[ki] = kv[:, :D].astype(mxu_dtype)
            v_cache[ki] = kv[:, D:].astype(mxu_dtype)

        k = k_cache[ki]
        v = v_cache[ki]
    else:
        # Fallback for very long S: recompute the fused K|V projection per step.
        kv = jnp.dot(x_kv_ref[...].astype(mxu_dtype), wkv_ref[...],
                     preferred_element_type=jnp.float32) + bkv_ref[...]
        k = kv[:, :D].astype(mxu_dtype)
        v = kv[:, D:].astype(mxu_dtype)

    q = q_scratch[...]

    # Q K^T as an NT contraction on the last dims (no materialized transpose).
    s = lax.dot_general(q, k, (((1,), (1,)), ((), ())),
                        preferred_element_type=jnp.float32)
    # Single-EUP sigmoid: sigmoid(z) = 0.5*tanh(z/2) + 0.5 (the /2 lives in `scale`).
    w = jnp.tanh(s) * 0.5 + 0.5

    pv = jnp.dot(w.astype(mxu_dtype), v, preferred_element_type=jnp.float32)

    @pl.when(ki == 0)
    def _():
        acc_scratch[...] = pv            # init folded into first update

    @pl.when(ki > 0)
    def _():
        acc_scratch[...] += pv

    @pl.when(ki == pl.num_programs(2) - 1)
    def _():
        o_ref[...] = acc_scratch[...].astype(o_ref.dtype)


def _pick_tile(s, target, min_tile):
    """Largest divisor of s <= target, preferring MXU-friendly multiples of
    256 then 128, never below min_tile; falls back to the full dimension
    (always a legal block) for awkward (e.g. prime) s."""
    if s <= target:
        return s
    for step in (256, 128):
        t = (target // step) * step
        while t >= step:
            if s % t == 0:
                return t
            t -= step
    t = (target // 8) * 8                # any sublane-aligned divisor
    while t >= min_tile:
        if s % t == 0:
            return t
        t -= 8
    return s                             # NOTE: huge prime S -> one big tile.


def _vmem_capacity_bytes():
    try:
        return int(pltpu.get_tpu_info().vmem_capacity_bytes)
    except Exception:
        return 64 * 1024 * 1024          # conservative (v7x per-core VMEM)


def sigmoid_attention(x, wq, bq, wk, bk, wv, bv, *, tq=512, tk=512):
    """x: [B, S, D]; wq/wk/wv: PyTorch nn.Linear weights [D_out, D_in]; b*: [D]."""
    B, S, D = x.shape
    TQ = _pick_tile(S, tq, min_tile=8)
    TK = _pick_tile(S, tk, min_tile=128)
    n_q, n_k = S // TQ, S // TK

    in_dtype = x.dtype
    # bf16 MXU operands (full-rate MXU) with f32 accumulation + f32 epilogue.
    mxu_dtype = jnp.bfloat16 if in_dtype == jnp.float32 else in_dtype
    mxu_isz = jnp.dtype(mxu_dtype).itemsize
    in_isz = jnp.dtype(in_dtype).itemsize

    # Pre-transpose weights to [D_in, D_out]; fuse K|V weights and biases.
    wq_t = wq.T.astype(mxu_dtype)                                   # [D, D]
    wkv_t = jnp.concatenate([wk.T, wv.T], axis=1).astype(mxu_dtype)  # [D, 2D]
    bq2 = bq.astype(jnp.float32).reshape(1, D)
    bkv2 = jnp.concatenate([bk, bv]).astype(jnp.float32).reshape(1, 2 * D)

    cap = _vmem_capacity_bytes()
    # Per-batch projected K|V cache in VMEM: enable when it fits comfortably
    # (~8 MiB on v7x, ~16 MiB on v5e/v6e).
    cache_bytes = S * 2 * D * mxu_isz
    cache_kv = cache_bytes <= cap // 8

    kernel = functools.partial(_sigmoid_attention_kernel, feature_dim=D,
                               mxu_dtype=mxu_dtype, cache_kv=cache_kv)

    x_q_spec = pl.BlockSpec((pl.Squeezed(), TQ, D), lambda b, qi, ki: (b, qi, 0))
    if cache_kv:
        # x is only consumed by the K/V projection during the qi == 0 sweep;
        # pin the block index afterwards so the pipeline stops re-streaming it.
        x_kv_spec = pl.BlockSpec(
            (pl.Squeezed(), TK, D),
            lambda b, qi, ki: (b, jnp.where(qi == 0, ki, 0), 0))
    else:
        x_kv_spec = pl.BlockSpec((pl.Squeezed(), TK, D),
                                 lambda b, qi, ki: (b, ki, 0))
    wq_spec = pl.BlockSpec((D, D), lambda b, qi, ki: (0, 0))
    wkv_spec = pl.BlockSpec((D, 2 * D), lambda b, qi, ki: (0, 0))
    bq_spec = pl.BlockSpec((1, D), lambda b, qi, ki: (0, 0))
    bkv_spec = pl.BlockSpec((1, 2 * D), lambda b, qi, ki: (0, 0))
    o_spec = pl.BlockSpec((pl.Squeezed(), TQ, D), lambda b, qi, ki: (b, qi, 0))

    scratch = [pltpu.VMEM((TQ, D), mxu_dtype),        # cached, scaled Q tile
               pltpu.VMEM((TQ, D), jnp.float32)]      # output accumulator
    if cache_kv:
        scratch += [pltpu.VMEM((n_k, TK, D), mxu_dtype),   # per-batch K cache
                    pltpu.VMEM((n_k, TK, D), mxu_dtype)]   # per-batch V cache

    # Rough VMEM budget: double-buffered streams + resident weights + scratch
    # + scores working set; capped below physical VMEM to leave compiler headroom.
    est = (2 * TQ * D * in_isz + 2 * TK * D * in_isz        # x_q / x_kv tiles
           + 2 * D * D * mxu_isz + 2 * D * 2 * D * mxu_isz  # wq / wkv (dbl-buf)
           + 2 * TQ * D * in_isz                            # output tile
           + TQ * D * (mxu_isz + 4)                         # q / acc scratch
           + (cache_bytes if cache_kv else 0)               # K/V caches
           + 3 * TQ * TK * 4)                               # scores / weights
    vmem_limit = int(min(max(est * 1.3, 32 * 1024 * 1024), 0.85 * cap))

    # In cache mode the q-tile axis must stay sequential (qi == 0 fills the
    # cache), so only the batch axis is "parallel" (v7x megacore wants B >= 2).
    dims = (("parallel", "arbitrary", "arbitrary") if cache_kv
            else ("parallel", "parallel", "arbitrary"))

    return pl.pallas_call(
        kernel,
        out_shape=jax.ShapeDtypeStruct((B, S, D), in_dtype),
        grid_spec=pltpu.PrefetchScalarGridSpec(
            num_scalar_prefetch=0,
            grid=(B, n_q, n_k),
            in_specs=[x_q_spec, x_kv_spec, wq_spec, wkv_spec, bq_spec, bkv_spec],
            out_specs=o_spec,
            scratch_shapes=scratch,
        ),
        compiler_params=pltpu.CompilerParams(
            dimension_semantics=dims,
            vmem_limit_bytes=vmem_limit,
        ),
    )(x, x, wq_t, wkv_t, bq2, bkv2)


def sigmoid_attention_ref(x, wq, bq, wk, bk, wv, bv):
    """Pure-JAX f32 reference matching the PyTorch forward."""
    D = x.shape[-1]
    q = x @ wq.T + bq
    k = x @ wk.T + bk
    v = x @ wv.T + bv
    scores = jnp.einsum("bqd,bkd->bqk", q, k) / jnp.sqrt(jnp.float32(D))
    w = jax.nn.sigmoid(scores)
    return jnp.einsum("bqk,bkd->bqd", w, v)


def _make_params(key, D):
    kwq, kbq, kwk, kbk, kwv, kbv = jax.random.split(key, 6)
    bound = 1.0 / math.sqrt(D)
    wq = jax.random.uniform(kwq, (D, D), jnp.float32, -bound, bound)
    bq = jax.random.uniform(kbq, (D,), jnp.float32, -bound, bound)
    wk = jax.random.uniform(kwk, (D, D), jnp.float32, -bound, bound)
    bk = jax.random.uniform(kbk, (D,), jnp.float32, -bound, bound)
    wv = jax.random.uniform(kwv, (D, D), jnp.float32, -bound, bound)
    bv = jax.random.uniform(kbv, (D,), jnp.float32, -bound, bound)
    return wq, bq, wk, bk, wv, bv


def _rel_err(out, ref):
    return float(jnp.max(jnp.abs(out - ref)) /
                 jnp.maximum(jnp.max(jnp.abs(ref)), 1.0))


if __name__ == "__main__":
    key = jax.random.PRNGKey(0)
    k1, k2, k3, k4 = jax.random.split(key, 4)

    # --- Primary small test consistent with the module: B=2, S=8, D=32. -----
    B, S, D = 2, 8, 32
    heads = 4  # the PyTorch forward never uses `heads`; unused here too.
    x = jax.random.normal(k1, (B, S, D), dtype=jnp.float32)
    params = _make_params(k2, D)

    out = jax.block_until_ready(sigmoid_attention(x, *params))
    ref = sigmoid_attention_ref(x, *params)
    assert out.shape == (B, S, D)
    # bf16 MXU operands (f32 accumulation) => tolerance relative to output scale.
    assert _rel_err(out, ref) < 2e-2, "mismatch vs reference"

    # --- Secondary check exercising the KV-cache + multi-tile accumulation. --
    B2, S2, D2 = 2, 256, 128
    x2 = jax.random.normal(k3, (B2, S2, D2), dtype=jnp.float32)
    params2 = _make_params(k4, D2)
    out2 = jax.block_until_ready(
        sigmoid_attention(x2, *params2, tq=64, tk=128))   # grid (2, 4, 2)
    ref2 = sigmoid_attention_ref(x2, *params2)
    assert _rel_err(out2, ref2) < 2e-2, "tiled mismatch"

    print("KERNEL_OK")
</pallas_src>

<mosaic_0001>
module attributes {stable_mosaic.version = 11 : i64} {
  func.func @_sigmoid_attention_kernel(%arg0: i32, %arg1: i32, %arg2: i32, %arg3: memref<1x8x32xf32, #tpu.memory_space<vmem>>, %arg4: memref<1x8x32xf32, #tpu.memory_space<vmem>>, %arg5: memref<32x32xbf16, #tpu.memory_space<vmem>>, %arg6: memref<32x64xbf16, #tpu.memory_space<vmem>>, %arg7: memref<1x32xf32, #tpu.memory_space<vmem>>, %arg8: memref<1x64xf32, #tpu.memory_space<vmem>>, %arg9: memref<1x8x32xf32, #tpu.memory_space<vmem>>, %arg10: memref<8x32xbf16, #tpu.memory_space<vmem>>, %arg11: memref<8x32xf32, #tpu.memory_space<vmem>>, %arg12: memref<1x8x32xbf16, #tpu.memory_space<vmem>>, %arg13: memref<1x8x32xbf16, #tpu.memory_space<vmem>>) attributes {dimension_semantics = [#tpu.dimension_semantics<parallel>, #tpu.dimension_semantics<arbitrary>, #tpu.dimension_semantics<arbitrary>], iteration_bounds = array<i64: 2, 1, 1>, scalar_prefetch = 0 : i64, scratch_operands = 4 : i64, tpu.core_type = #tpu.core_type<tc>, window_params = [{transform_indices = @transform_0, window_bounds = array<i64: 1, 8, 32>}, {transform_indices = @transform_1, window_bounds = array<i64: 1, 8, 32>}, {pipeline_mode = #tpu.pipeline_mode<synchronous>, transform_indices = @transform_2, window_bounds = array<i64: 32, 32>}, {pipeline_mode = #tpu.pipeline_mode<synchronous>, transform_indices = @transform_3, window_bounds = array<i64: 32, 64>}, {pipeline_mode = #tpu.pipeline_mode<synchronous>, transform_indices = @transform_4, window_bounds = array<i64: 1, 32>}, {pipeline_mode = #tpu.pipeline_mode<synchronous>, transform_indices = @transform_5, window_bounds = array<i64: 1, 64>}, {transform_indices = @transform_6, window_bounds = array<i64: 1, 8, 32>}]} {
    %c0_i32 = arith.constant 0 : i32
    %0 = arith.cmpi eq, %arg2, %c0_i32 : i32
    %1 = arith.extui %0 : i1 to i32
    %c0_i32_0 = arith.constant 0 : i32
    %2 = arith.cmpi ne, %1, %c0_i32_0 : i32
    scf.if %2 {
      %c0_17 = arith.constant 0 : index
      %c0_18 = arith.constant 0 : index
      %c0_19 = arith.constant 0 : index
      %30 = vector.load %arg3[%c0_17, %c0_18, %c0_19] : memref<1x8x32xf32, #tpu.memory_space<vmem>>, vector<1x8x32xf32>
      %31 = vector.shape_cast %30 : vector<1x8x32xf32> to vector<8x32xf32>
      %32 = arith.truncf %31 : vector<8x32xf32> to vector<8x32xbf16>
      %c0_20 = arith.constant 0 : index
      %c0_21 = arith.constant 0 : index
      %33 = vector.load %arg5[%c0_20, %c0_21] : memref<32x32xbf16, #tpu.memory_space<vmem>>, vector<32x32xbf16>
      %cst_22 = arith.constant dense<0.000000e+00> : vector<8x32xf32>
      %34 = tpu.matmul %32, %33, %cst_22 {dimension_numbers = #tpu.dot_dimension_numbers<[1], [0], [0], [1], [0, 0, 1, 1], [], []>} : vector<8x32xbf16>, vector<32x32xbf16>, vector<8x32xf32> -> vector<8x32xf32>
      %c0_23 = arith.constant 0 : index
      %c0_24 = arith.constant 0 : index
      %35 = vector.load %arg7[%c0_23, %c0_24] : memref<1x32xf32, #tpu.memory_space<vmem>>, vector<1x32xf32>
      %36 = vector.broadcast %35 : vector<1x32xf32> to vector<8x32xf32>
      %37 = arith.addf %34, %36 : vector<8x32xf32>
      %cst_25 = arith.constant 0.0883883461 : f32
      %38 = vector.broadcast %cst_25 : f32 to vector<8x32xf32>
      %39 = arith.mulf %37, %38 : vector<8x32xf32>
      %40 = arith.truncf %39 : vector<8x32xf32> to vector<8x32xbf16>
      %c0_26 = arith.constant 0 : index
      %c0_27 = arith.constant 0 : index
      %41 = vector.load %arg10[%c0_26, %c0_27] : memref<8x32xbf16, #tpu.memory_space<vmem>>, vector<8x32xbf16>
      tpu.vector_store %arg10[%c0_26, %c0_27], %40 {strides = array<i32>} : memref<8x32xbf16, #tpu.memory_space<vmem>>, vector<8x32xbf16>,
    } else {
    }
    %c0_i32_1 = arith.constant 0 : i32
    %3 = arith.cmpi eq, %arg1, %c0_i32_1 : i32
    %4 = arith.extui %3 : i1 to i32
    %c0_i32_2 = arith.constant 0 : i32
    %5 = arith.cmpi ne, %4, %c0_i32_2 : i32
    scf.if %5 {
      %c0_17 = arith.constant 0 : index
      %c0_18 = arith.constant 0 : index
      %c0_19 = arith.constant 0 : index
      %30 = vector.load %arg4[%c0_17, %c0_18, %c0_19] : memref<1x8x32xf32, #tpu.memory_space<vmem>>, vector<1x8x32xf32>
      %31 = vector.shape_cast %30 : vector<1x8x32xf32> to vector<8x32xf32>
      %32 = arith.truncf %31 : vector<8x32xf32> to vector<8x32xbf16>
      %c0_20 = arith.constant 0 : index
      %c0_21 = arith.constant 0 : index
      %33 = vector.load %arg6[%c0_20, %c0_21] : memref<32x64xbf16, #tpu.memory_space<vmem>>, vector<32x64xbf16>
      %cst_22 = arith.constant dense<0.000000e+00> : vector<8x64xf32>
      %34 = tpu.matmul %32, %33, %cst_22 {dimension_numbers = #tpu.dot_dimension_numbers<[1], [0], [0], [1], [0, 0, 1, 1], [], []>} : vector<8x32xbf16>, vector<32x64xbf16>, vector<8x64xf32> -> vector<8x64xf32>
      %c0_23 = arith.constant 0 : index
      %c0_24 = arith.constant 0 : index
      %35 = vector.load %arg8[%c0_23, %c0_24] : memref<1x64xf32, #tpu.memory_space<vmem>>, vector<1x64xf32>
      %36 = vector.broadcast %35 : vector<1x64xf32> to vector<8x64xf32>
      %37 = arith.addf %34, %36 : vector<8x64xf32>
      %38 = vector.extract_strided_slice %37 {offsets = [0, 0], sizes = [8, 32], strides = [1, 1]} : vector<8x64xf32> to vector<8x32xf32>
      %39 = arith.truncf %38 : vector<8x32xf32> to vector<8x32xbf16>
      %40 = arith.index_cast %arg2 : i32 to index
      %c0_25 = arith.constant 0 : index
      %c0_26 = arith.constant 0 : index
      %41 = vector.load %arg12[%40, %c0_25, %c0_26] : memref<1x8x32xbf16, #tpu.memory_space<vmem>>, vector<1x8x32xbf16>
      %42 = vector.shape_cast %41 : vector<1x8x32xbf16> to vector<8x32xbf16>
      %43 = vector.shape_cast %39 : vector<8x32xbf16> to vector<1x8x32xbf16>
      tpu.vector_store %arg12[%40, %c0_25, %c0_26], %43 {strides = array<i32>} : memref<1x8x32xbf16, #tpu.memory_space<vmem>>, vector<1x8x32xbf16>,
      %44 = vector.extract_strided_slice %37 {offsets = [0, 32], sizes = [8, 32], strides = [1, 1]} : vector<8x64xf32> to vector<8x32xf32>
      %45 = arith.truncf %44 : vector<8x32xf32> to vector<8x32xbf16>
      %46 = arith.index_cast %arg2 : i32 to index
      %c0_27 = arith.constant 0 : index
      %c0_28 = arith.constant 0 : index
      %47 = vector.load %arg13[%46, %c0_27, %c0_28] : memref<1x8x32xbf16, #tpu.memory_space<vmem>>, vector<1x8x32xbf16>
      %48 = vector.shape_cast %47 : vector<1x8x32xbf16> to vector<8x32xbf16>
      %49 = vector.shape_cast %45 : vector<8x32xbf16> to vector<1x8x32xbf16>
      tpu.vector_store %arg13[%46, %c0_27, %c0_28], %49 {strides = array<i32>} : memref<1x8x32xbf16, #tpu.memory_space<vmem>>, vector<1x8x32xbf16>,
    } else {
    }
    %6 = arith.index_cast %arg2 : i32 to index
    %c0 = arith.constant 0 : index
    %c0_3 = arith.constant 0 : index
    %7 = vector.load %arg12[%6, %c0, %c0_3] : memref<1x8x32xbf16, #tpu.memory_space<vmem>>, vector<1x8x32xbf16>
    %8 = vector.shape_cast %7 : vector<1x8x32xbf16> to vector<8x32xbf16>
    %9 = arith.index_cast %arg2 : i32 to index
    %c0_4 = arith.constant 0 : index
    %c0_5 = arith.constant 0 : index
    %10 = vector.load %arg13[%9, %c0_4, %c0_5] : memref<1x8x32xbf16, #tpu.memory_space<vmem>>, vector<1x8x32xbf16>
    %11 = vector.shape_cast %10 : vector<1x8x32xbf16> to vector<8x32xbf16>
    %c0_6 = arith.constant 0 : index
    %c0_7 = arith.constant 0 : index
    %12 = vector.load %arg10[%c0_6, %c0_7] : memref<8x32xbf16, #tpu.memory_space<vmem>>, vector<8x32xbf16>
    %cst = arith.constant dense<0.000000e+00> : vector<8x8xf32>
    %13 = tpu.matmul %12, %8, %cst {dimension_numbers = #tpu.dot_dimension_numbers<[1], [1], [0], [0], [0, 0, 1, 0], [], []>} : vector<8x32xbf16>, vector<8x32xbf16>, vector<8x8xf32> -> vector<8x8xf32>
    %14 = math.tanh %13 : vector<8x8xf32>
    %cst_8 = arith.constant 5.000000e-01 : f32
    %15 = vector.broadcast %cst_8 : f32 to vector<8x8xf32>
    %16 = arith.mulf %14, %15 : vector<8x8xf32>
    %cst_9 = arith.constant 5.000000e-01 : f32
    %17 = vector.broadcast %cst_9 : f32 to vector<8x8xf32>
    %18 = arith.addf %16, %17 : vector<8x8xf32>
    %19 = arith.truncf %18 : vector<8x8xf32> to vector<8x8xbf16>
    %cst_10 = arith.constant dense<0.000000e+00> : vector<8x32xf32>
    %20 = tpu.matmul %19, %11, %cst_10 {dimension_numbers = #tpu.dot_dimension_numbers<[1], [0], [0], [1], [0, 0, 1, 1], [], []>} : vector<8x8xbf16>, vector<8x32xbf16>, vector<8x32xf32> -> vector<8x32xf32>
    %c0_i32_11 = arith.constant 0 : i32
    %21 = arith.cmpi eq, %arg2, %c0_i32_11 : i32
    %22 = arith.extui %21 : i1 to i32
    %c0_i32_12 = arith.constant 0 : i32
    %23 = arith.cmpi ne, %22, %c0_i32_12 : i32
    scf.if %23 {
      %c0_17 = arith.constant 0 : index
      %c0_18 = arith.constant 0 : index
      %30 = vector.load %arg11[%c0_17, %c0_18] : memref<8x32xf32, #tpu.memory_space<vmem>>, vector<8x32xf32>
      tpu.vector_store %arg11[%c0_17, %c0_18], %20 {strides = array<i32>} : memref<8x32xf32, #tpu.memory_space<vmem>>, vector<8x32xf32>,
    } else {
    }
    %c0_i32_13 = arith.constant 0 : i32
    %24 = arith.cmpi sgt, %arg2, %c0_i32_13 : i32
    %25 = arith.extui %24 : i1 to i32
    %c0_i32_14 = arith.constant 0 : i32
    %26 = arith.cmpi ne, %25, %c0_i32_14 : i32
    scf.if %26 {
      %c0_17 = arith.constant 0 : index
      %c0_18 = arith.constant 0 : index
      %30 = vector.load %arg11[%c0_17, %c0_18] : memref<8x32xf32, #tpu.memory_space<vmem>>, vector<8x32xf32>
      %31 = arith.addf %30, %20 : vector<8x32xf32>
      %c0_19 = arith.constant 0 : index
      %c0_20 = arith.constant 0 : index
      %32 = vector.load %arg11[%c0_19, %c0_20] : memref<8x32xf32, #tpu.memory_space<vmem>>, vector<8x32xf32>
      tpu.vector_store %arg11[%c0_19, %c0_20], %31 {strides = array<i32>} : memref<8x32xf32, #tpu.memory_space<vmem>>, vector<8x32xf32>,
    } else {
    }
    %c0_i32_15 = arith.constant 0 : i32
    %27 = arith.cmpi eq, %arg2, %c0_i32_15 : i32
    %28 = arith.extui %27 : i1 to i32
    %c0_i32_16 = arith.constant 0 : i32
    %29 = arith.cmpi ne, %28, %c0_i32_16 : i32
    scf.if %29 {
      %c0_17 = arith.constant 0 : index
      %c0_18 = arith.constant 0 : index
      %30 = vector.load %arg11[%c0_17, %c0_18] : memref<8x32xf32, #tpu.memory_space<vmem>>, vector<8x32xf32>
      %c0_19 = arith.constant 0 : index
      %c0_20 = arith.constant 0 : index
      %c0_21 = arith.constant 0 : index
      %31 = vector.load %arg9[%c0_19, %c0_20, %c0_21] : memref<1x8x32xf32, #tpu.memory_space<vmem>>, vector<1x8x32xf32>
      %32 = vector.shape_cast %31 : vector<1x8x32xf32> to vector<8x32xf32>
      %33 = vector.shape_cast %30 : vector<8x32xf32> to vector<1x8x32xf32>
      tpu.vector_store %arg9[%c0_19, %c0_20, %c0_21], %33 {strides = array<i32>} : memref<1x8x32xf32, #tpu.memory_space<vmem>>, vector<1x8x32xf32>,
    } else {
    }
    return
  }
  func.func @transform_0(%arg0: i32, %arg1: i32, %arg2: i32) -> (i32, i32, i32) {
    %c0_i32 = arith.constant 0 : i32
    %c0_i32_0 = arith.constant 0 : i32
    return %arg0, %arg1, %c0_i32 : i32, i32, i32
  }
  func.func @transform_1(%arg0: i32, %arg1: i32, %arg2: i32) -> (i32, i32, i32) {
    %c0_i32 = arith.constant 0 : i32
    %0 = arith.cmpi eq, %arg1, %c0_i32 : i32
    %c0_i32_0 = arith.constant 0 : i32
    %1 = arith.select %0, %arg2, %c0_i32_0 : i32
    %c0_i32_1 = arith.constant 0 : i32
    %c0_i32_2 = arith.constant 0 : i32
    return %arg0, %1, %c0_i32_1 : i32, i32, i32
  }
  func.func @transform_2(%arg0: i32, %arg1: i32, %arg2: i32) -> (i32, i32) {
    %c0_i32 = arith.constant 0 : i32
    %c0_i32_0 = arith.constant 0 : i32
    %c0_i32_1 = arith.constant 0 : i32
    return %c0_i32, %c0_i32_0 : i32, i32
  }
  func.func @transform_3(%arg0: i32, %arg1: i32, %arg2: i32) -> (i32, i32) {
    %c0_i32 = arith.constant 0 : i32
    %c0_i32_0 = arith.constant 0 : i32
    %c0_i32_1 = arith.constant 0 : i32
    return %c0_i32, %c0_i32_0 : i32, i32
  }
  func.func @transform_4(%arg0: i32, %arg1: i32, %arg2: i32) -> (i32, i32) {
    %c0_i32 = arith.constant 0 : i32
    %c0_i32_0 = arith.constant 0 : i32
    %c0_i32_1 = arith.constant 0 : i32
    return %c0_i32, %c0_i32_0 : i32, i32
  }
  func.func @transform_5(%arg0: i32, %arg1: i32, %arg2: i32) -> (i32, i32) {
    %c0_i32 = arith.constant 0 : i32
    %c0_i32_0 = arith.constant 0 : i32
    %c0_i32_1 = arith.constant 0 : i32
    return %c0_i32, %c0_i32_0 : i32, i32
  }
  func.func @transform_6(%arg0: i32, %arg1: i32, %arg2: i32) -> (i32, i32, i32) {
    %c0_i32 = arith.constant 0 : i32
    %c0_i32_0 = arith.constant 0 : i32
    return %arg0, %arg1, %c0_i32 : i32, i32, i32
  }
}

</mosaic_0001>

<bundles_post_ra>
// kernel: tpu_custom_call.1
= control target key start
LH: loop header
LB: loop body
LE: loop exit
PB: predicated region body
PF: predicated region fallthrough
CT: control target
= control target key end

     0   :  { %s1538_s0 = inlined_call_operand.hbm [shape: f32[2,8,32], index: 0, kind: input, shape index: {}]   ;;  %s1539_s1 = inlined_call_operand.hbm [shape: f32[2,8,32], index: 1, kind: input, shape index: {}]   ;;  %s1540_s2 = inlined_call_operand.hbm [shape: bf16[32,32], index: 2, kind: input, shape index: {}]   ;;  %s1541_s3 = inlined_call_operand.hbm [shape: bf16[32,64], index: 3, kind: input, shape index: {}]   ;;  %s1542_s4 = inlined_call_operand.vmem [shape: f32[1,32], index: 4, kind: input, shape index: {}]   ;;  %s1543_s5 = inlined_call_operand.vmem [shape: f32[1,64], index: 5, kind: input, shape index: {}]   ;;  %s1544_s6 = inlined_call_operand.hbm [shape: f32[2,8,32], index: 6, kind: output, shape index: {}]  }
   0x1   :  { %1551 = sst [smem:[#allocation23_spill]] %s1540_s2 }
   0x2   :  { %1552 = sst [smem:[#allocation24_spill]] %s1541_s3 }
   0x3   :  { %11 = vsyncpa [#allocation7], 0 }
   0x4   :  { %13 = vsyncpa [#allocation7 + $0x1], 0 }
   0x5   :  { %14 = vsyncpa [#allocation10], 0 }
   0x6   :  { %16 = vsyncpa [#allocation10 + $0x1], 0 }
   0x7   :  { %17 = vsyncpa [#allocation13], 0 }
   0x8   :  { %18 = vsyncpa [#allocation8], 0 }
   0x9   :  { %20 = vsyncpa [#allocation8 + $0x1], 0  ;;  %s1230_s21 = smov 0   ;;  %s1232_s22 = smov 0  }
   0xa   :  { %s1234_s23 = smov 0   ;;  %s1236_s24 = smov 0  }
   0xb   :  { %s1238_s25 = smov 0   ;;  %s1240_s26 = smov 0  }
   0xc LB: > { %1553 = sst [smem:[#allocation20_spill]] %s1179_s25  ;;  %s1261_s27 = sadd.s32 4294967295, %s1183_s26   ;;  %s1183_s26 = sphi %s1240_s26, %s26_s26   ;;  %s1179_s25 = sphi %s1238_s25, %s1576_s25   ;;  %s1175_s24 = sphi %s1236_s24, %s1575_s24   ;;  %s1171_s23 = sphi %s1234_s23, %s1579_s23   ;;  %s1167_s22 = sphi %s1232_s22, %s1578_s22   ;;  %s1163_s21 = sphi %s1230_s21, %s1577_s21  }
   0xd   : > { %s805_s28 = sadd.s32 4294967294, %s1183_s26   ;;  %p67_p0 = scmp.ne.s32.totalorder %s1167_s22, %s1163_s21 }
   0xe   : > { %p1545_p1 = scmp.eq.s32.totalorder %s1261_s27, 0  ;;  %p215_p3 = scmp.eq.s32.totalorder %s805_s28, 1 }
   0xf   : > { %p806_p5 = scmp.ge.s32.totalorder %s1183_s26, 1  ;;  %p222_p7 = scmp.lt.s32.totalorder %s1183_s26, 3 }
  0x10   : > { %p1270_p4 = por %p1545_p1, %p67_p0  ;;  %p1275_p6 = por %p215_p3, %p67_p0 }
  0x11   : > { %p1280_p8 = pnand %p806_p5, %p222_p7  ;;  %s1185_s8 = smov [#allocation11]  }
  0x12   : > { %s1554_s29 = scalar_select %p1270_p4, 1, 0 }
  0x13   : > { %s1555_s30 = scalar_select %p1275_p6, 1, 0 }
  0x14   : > { %s1556_s7 = scalar_select %p1280_p8, 1, 0 }
  0x15   : > { %s234_s9 = sshll.u32 %s1185_s8, 4  ;;  %p888_p9 = pneg %p1280_p8  ;;  %s1284_s9 = int_to_ptr.vmem [resolvable:$true] %s234_s9 }
  0x16   : > { %s1186_s11 = smov [#allocation12]   ;;  %s1558_s2 = sld [smem:[#allocation23_spill]] }
  0x17   : > { %p1291_p11 = pnand %p888_p9, %p1545_p1  ;;  %s247_s12 = sshll.u32 %s1186_s11, 4  ;;  %s1295_s12 = int_to_ptr.vmem [resolvable:$true] %s247_s12 }
  0x19   : > { %p975_p13 = pneg %p1291_p11 }
  0x1c   : > { %s973_s15 = scalar_lea.hbm %s1558_s2, 256 }
  0x1d   : > { %p974_p12 = scmp.ne.s32.totalorder %s1558_s2, %s973_s15  ;;  %p980_p5 = scmp.lt.u32.totalorder %s973_s15, %s1558_s2 }
  0x1f   : > { %p976_p0 = pnand %p975_p13, %p974_p12 }
  0x21   : > { %p977_p3 = pneg %p976_p0 }
  0x23   : > { %p982_p7 = pnand %p980_p5, %p977_p3 }
  0x25   : > { %985 = shalt.err (!%p982_p7)
}
  0x26   : > { %s986_s20 = scalar_lea.vmem %s1284_s9, 256  ;;  %p994_p2 = scmp.lt.s32.totalorder %s1284_s9, %s1284_s9 }
  0x27   : > { %p987_p9 = scmp.ne.s32.totalorder %s1284_s9, %s986_s20  ;;  %p995_p12 = scmp.lt.s32.totalorder %s986_s20, %s986_s20 }
  0x29   : > { %p989_p10 = pnand %p987_p9, %p975_p13  ;;  %p996_p0 = por %p995_p12, %p994_p2 }
  0x2b   : > { %p990_p1 = pneg %p989_p10 }
  0x2d   : > { %p997_p6 = pnand %p996_p0, %p990_p1 }
  0x2f   : > { %1000 = shalt.err (!%p997_p6)
}
  0x30   : > { %s1187_s28 = smov 64   ;;  %s1188_s8 = smov 4  }
  0x31   : > { %891 = dma.hbm_to_vmem [thread:$0]  (!%p1291_p11), %s1558_s2, 256, %s1284_s9, [#allocation10], %s1187_s28, %s1187_s28, %s1188_s8  }
  0x32   : > { %s1559_s3 = sld [smem:[#allocation24_spill]] }
  0x38   : > { %s1001_s16 = scalar_lea.hbm %s1559_s3, 256 }
  0x39   : > { %p1002_p2 = scmp.ne.s32.totalorder %s1559_s3, %s1001_s16  ;;  %p1008_p10 = scmp.lt.u32.totalorder %s1001_s16, %s1559_s3 }
  0x3b   : > { %p1004_p1 = pnand %p1002_p2, %p975_p13 }
  0x3d   : > { %p1005_p6 = pneg %p1004_p1 }
  0x3f   : > { %p1010_p3 = pnand %p1008_p10, %p1005_p6 }
  0x41   : > { %1013 = shalt.err (!%p1010_p3)
}
  0x42   : > { %s1014_s9 = scalar_lea.vmem %s1295_s12, 256  ;;  %p1022_p12 = scmp.lt.s32.totalorder %s1295_s12, %s1295_s12 }
  0x43   : > { %p1015_p5 = scmp.ne.s32.totalorder %s1295_s12, %s1014_s9  ;;  %p1023_p0 = scmp.lt.s32.totalorder %s1014_s9, %s1014_s9 }
  0x45   : > { %p1017_p7 = pnand %p1015_p5, %p975_p13  ;;  %p1024_p2 = por %p1023_p0, %p1022_p12 }
  0x47   : > { %p1018_p9 = pneg %p1017_p7 }
  0x49   : > { %p1025_p1 = pnand %p1024_p2, %p1018_p9 }
  0x4b   : > { %1028 = shalt.err (!%p1025_p1)
}
  0x4c   : > { %894 = dma.hbm_to_vmem [thread:$0]  (!%p1291_p11), %s1559_s3, 256, %s1295_s12, [#allocation13], %s1187_s28, %s1187_s28, %s1188_s8  }
  0x4d   : > { %s45_s14 = sadd.s32 1, %s1179_s25  ;;  %s54_s15 = sadd.s32 1, %s1171_s23 }
  0x4e   : > { %p47_p13 = scmp.ge.s32.totalorder %s45_s14, 2  ;;  %p61_p6 = scmp.ne.s32.totalorder %s1171_s23, %s1167_s22 }
  0x4f   : > { %p62_p10 = scmp.eq.s32.totalorder %s1183_s26, 0  ;;  %p908_p3 = scmp.lt.s32.totalorder %s1183_s26, 2 }
  0x50   : > { %s1581_s14 = smov (%p47_p13, %s45_s14), 0  ;;  %p1561_p7 = scmp.eq.s32.totalorder %s1261_s27, 1 }
  0x51   : > { %1560 = sst [smem:[#allocation21_spill]] %s1581_s14  ;;  %p63_p5 = por %p62_p10, %p61_p6 }
  0x52   : > { %p1359_p9 = por %p1561_p7, %p61_p6  ;;  %s49_s16 = ssub.s32 %s1179_s25, %s1581_s14 }
  0x53   : > { %s267_s17 = sand.u32 1, %s1171_s23   ;;  %p52_p12 = scmp.eq.s32.totalorder %s49_s16, 0 }
  0x54   : > { %s1562_s10 = scalar_select %p1359_p9, 1, 0 }
  0x55   : > { %s1366_s12 = sshll.u32 %s267_s17, 3  ;;  %s811_s28 = sshll.u32 %s1179_s25, 7 }
  0x56   : > { %s1370_s8 = scalar_select %p52_p12, %s1171_s23, %s54_s15  }
  0x57   : > { %s1375_s20 = scalar_lea.hbm %s1538_s0, %s811_s28  ;;  %s271_s9 = scalar_lea.vmem [#allocation6], %s1366_s12 }
  0x58   : > { %1563 = sst [smem:[#allocation22_spill]] %s1370_s8  ;;  %s279_s11 = sshll.u32 %s271_s9, 4  ;;  %s1384_s11 = int_to_ptr.vmem [resolvable:$true] %s279_s11 }
  0x59   : > { %p1380_p11 = pnand %p908_p3, %p63_p5  ;;  %s1389_s18 = scalar_lea.hbm %s1539_s1, %s811_s28 }
  0x5a   : > { %s268_s19 = scalar_lea.sflag [#allocation7], %s267_s17  ;;  %s1029_s2 = scalar_lea.hbm %s1375_s20, 128 }
  0x5b   : > { %p1030_p0 = scmp.ne.s32.totalorder %s1375_s20, %s1029_s2  ;;  %p1031_p2 = pneg %p1380_p11 }
  0x5c   : > { %s1034_s14 = scalar_lea.hbm %s1538_s0, 256  ;;  %p1035_p6 = scmp.lt.u32.totalorder %s1375_s20, %s1538_s0 }
  0x5d   : > { %p1032_p1 = pnand %p1031_p2, %p1030_p0  ;;  %p1036_p10 = scmp.lt.u32.totalorder %s1034_s14, %s1029_s2 }
  0x5e   : > { %p1038_p5 = scmp.lt.u32.totalorder %s1029_s2, %s1375_s20 }
  0x5f   : > { %p1033_p13 = pneg %p1032_p1  ;;  %p1037_p3 = por %p1036_p10, %p1035_p6 }
  0x61   : > { %p1039_p7 = por %p1038_p5, %p1037_p3 }
  0x63   : > { %p1040_p12 = pnand %p1039_p7, %p1033_p13 }
  0x65   : > { %1043 = shalt.err (!%p1040_p12)
}
  0x66   : > { %s1044_s17 = scalar_lea.vmem %s1384_s11, 128  ;;  %s1189_s3 = smov [#allocation6]  }
  0x67   : > { %p1045_p0 = scmp.ne.s32.totalorder %s1384_s11, %s1044_s17  ;;  %s1049_s28 = sshll.u32 %s1189_s3, 4  ;;  %s1050_s28 = int_to_ptr.vmem [resolvable:$false] %s1049_s28 }
  0x68   : > { %s1051_s25 = scalar_lea.vmem %s1050_s28, 256  ;;  %p1052_p4 = scmp.lt.s32.totalorder %s1384_s11, %s1050_s28 }
  0x69   : > { %p1047_p1 = pnand %p1045_p0, %p1031_p2  ;;  %p1053_p6 = scmp.lt.s32.totalorder %s1051_s25, %s1044_s17 }
  0x6b   : > { %p1048_p9 = pneg %p1047_p1  ;;  %p1054_p10 = por %p1053_p6, %p1052_p4 }
  0x6d   : > { %p1055_p3 = pnand %p1054_p10, %p1048_p9 }
  0x6f   : > { %1058 = shalt.err (!%p1055_p3)
}
  0x70   : > { %898 = dma.hbm_to_vmem [thread:$0]  (!%p1380_p11), %s1375_s20, 128, %s1384_s11, %s268_s19  }
  0x71   : > { %s286_s2 = sand.u32 1, %s1183_s26   ;;  %s290_s14 = scalar_lea.vmem [#allocation9], %s1366_s12 }
  0x72   : > { %s300_s8 = sshll.u32 %s290_s14, 4  ;;  %s287_s15 = scalar_lea.sflag [#allocation10], %s286_s2  ;;  %s301_s8 = int_to_ptr.vmem [resolvable:$true] %s300_s8 }
  0x73   : > { %s1059_s16 = scalar_lea.hbm %s1389_s18, 128  ;;  %s1064_s3 = scalar_lea.hbm %s1539_s1, 256 }
  0x74   : > { %p1060_p4 = scmp.ne.s32.totalorder %s1389_s18, %s1059_s16  ;;  %p1065_p5 = scmp.lt.u32.totalorder %s1389_s18, %s1539_s1 }
  0x75   : > { %p1066_p7 = scmp.lt.u32.totalorder %s1064_s3, %s1059_s16  ;;  %p1068_p0 = scmp.lt.u32.totalorder %s1059_s16, %s1389_s18 }
  0x76   : > { %p1062_p9 = pnand %p1060_p4, %p1031_p2 }
  0x77   : > { %p1067_p12 = por %p1066_p7, %p1065_p5 }
  0x78   : > { %p1063_p13 = pneg %p1062_p9 }
  0x79   : > { %p1069_p1 = por %p1068_p0, %p1067_p12 }
  0x7b   : > { %p1070_p6 = pnand %p1069_p1, %p1063_p13 }
  0x7d   : > { %1073 = shalt.err (!%p1070_p6)
}
  0x7e   : > { %s1074_s12 = scalar_lea.vmem %s301_s8, 128  ;;  %s1190_s20 = smov [#allocation9]  }
  0x7f   : > { %p1075_p10 = scmp.ne.s32.totalorder %s301_s8, %s1074_s12  ;;  %s1079_s11 = sshll.u32 %s1190_s20, 4  ;;  %s1080_s11 = int_to_ptr.vmem [resolvable:$false] %s1079_s11 }
  0x80   : > { %s1081_s19 = scalar_lea.vmem %s1080_s11, 256  ;;  %p1082_p9 = scmp.lt.s32.totalorder %s301_s8, %s1080_s11 }
  0x81   : > { %p1077_p3 = pnand %p1075_p10, %p1031_p2  ;;  %p1083_p8 = scmp.lt.s32.totalorder %s1081_s19, %s1074_s12 }
  0x83   : > { %p1078_p4 = pneg %p1077_p3  ;;  %p1084_p5 = por %p1083_p8, %p1082_p9 }
  0x85   : > { %p1085_p7 = pnand %p1084_p5, %p1078_p4 }
  0x87   : > { %1088 = shalt.err (!%p1085_p7)
}
  0x88   : > { %901 = dma.hbm_to_vmem [thread:$0]  (!%p1380_p11), %s1389_s18, 128, %s301_s8, %s287_s15  }
  0x89   : > { %p1565_p13 = scmp.ne.s32.totalorder %s1556_s7, 0 }
  0x8a   : > { %s1440_s2 = sand.u32 (!%p1565_p13), 1, %s1167_s22   ;;  %p1566_p8 = scmp.ne.s32.totalorder (!%p1565_p13), %s1554_s29, 0 }
  0x8b   : > { %309 = sbr.rel (%p1565_p13) target bundleno = 862 (0x35e), region = 44  ;;  %s1443_s14 = sshll.u32 (!%p1565_p13), %s1440_s2, 3 }
  0x8c   : > { %s312_s16 = scalar_lea.sflag (!%p1565_p13), [#allocation7], %s1440_s2  ;;  %s315_s9 = scalar_lea.vmem (!%p1565_p13), [#allocation6], %s1443_s14 }
  0x92   : > { %1142 = dma.done.wait (%p1566_p8), %s312_s16, 128  }
  0x93   : > { %1144 = vsyncadd (%p1566_p8), %s312_s16, 4294967168  ;;  %s320_s7 = sand.u32 1, %s1261_s27   ;;  %s324_s18 = scalar_lea.vmem [#allocation9], %s1443_s14 }
  0x94   : > { %s321_s13 = scalar_lea.sflag [#allocation10], %s320_s7 }
  0x95   : > { %1146 = dma.done.wait (%p1566_p8), %s321_s13, 128  }
  0x96   : > { %1148 = vsyncadd (%p1566_p8), %s321_s13, 4294967168  ;;  %p1567_p11 = scmp.eq.s32.totalorder %s1261_s27, 0 }
  0x98   : > { %1150 = dma.done.wait (%p1567_p11), [#allocation10], 256   ;;  %p1568_p2 = pmov %p1567_p11 }
  0x9a   : > { %1152 = vsyncadd (%p1568_p2), [#allocation10], 4294967040  ;;  %p1569_p12 = pmov %p1568_p2 }
  0x9b   : > { %p1570_p0 = pmov %p1568_p2 }
  0x9c   : > { %1154 = dma.done.wait (%p1569_p12), [#allocation13], 256  }
  0x9d   : > { %1156 = vsyncadd (%p1570_p0), [#allocation13], 4294967040  ;;  %v1191_v0 = vmov 0.0   ;;  %vm1192_vm0 = vmmov 0   ;;  %v967_v1 = vld [vmem:[#allocation12] sm:$0xff]   ;;  %v968_v2 = vld [vmem:[#allocation11] sm:$0xff]  }
  0x9e   : > { %854 = vmatprep.subr.bf16.mxu1 %v1191_v0  ;;  %846 = vmatprep.subr.bf16.mxu0 %v1191_v0  ;;  %v969_v3 = vld [vmem:[#allocation12 + $0x8] sm:$0xff]   ;;  %v970_v5 = vld [vmem:[#allocation11 + $0x8] sm:$0xff]   ;;  %vm398_vm1 = vcmask 261120   ;;  %vm444_vm2 = vcmask 257024   ;;  %s1193_s17 = smov 96   ;;  %vm595_vm3 = vcmask 1043456  }
  0x9f   : > { %858 = vmatprep.mubr.msk.bf16.mxu1 %vm1192_vm0, %v1191_v0  ;;  %850 = vmatprep.mubr.msk.bf16.mxu0 %vm1192_vm0, %v1191_v0  ;;  %v450_v4 = vld [vmem:[%s324_s18] sm:$0xff]  ;;  %v373_v6 = vld [vmem:[%s315_s9] sm:$0xff]  ;;  %vm591_vm4 = vcmask 64512   ;;  %s832_s3 = sshll.u32 %s1175_s24, 7  ;;  %s365_s28 = scalar_lea.vmem [#allocation14], %s1443_s14 }
  0xa0   : > { %855 = vmatpush3.bf16.msra.mxu1 %v967_v1  ;;  %847 = vmatpush3.bf16.msra.mxu0 %v968_v2  ;;  %v451_v7 = vpack.c.bf16 %v450_v4, %v450_v4  ;;  %v374_v8 = vpack.c.bf16 %v373_v6, %v373_v6  ;;  %v824_v9 = vld [vmem:[%s1543_s5] ss:$0 sm:$0xff]  ;;  %s670_s25 = sshll.u32 %s365_s28, 4  ;;  %s1488_s11 = scalar_lea.hbm %s1544_s6, %s832_s3  ;;  %s1490_s25 = int_to_ptr.vmem [resolvable:$true] %s670_s25 }
  0xa1   : > { %856 = vmatprep.subr.bf16.mxu1 %v1191_v0  ;;  %848 = vmatprep.subr.bf16.mxu0 %v1191_v0  ;;  %v820_v10 = vld [vmem:[%s1542_s4] ss:$0 sm:$0xff]  ;;  %s656_s19 = scalar_lea.sflag [#allocation8], %s1440_s2  ;;  %s1089_s16 = scalar_lea.vmem %s1490_s25, 128 }
  0xa2   : > { %p1090_p1 = scmp.ne.s32.totalorder %s1490_s25, %s1089_s16  ;;  %p1571_p6 = scmp.ne.s32.totalorder %s1562_s10, 0 }
  0xa3   : > { %s1194_s24 = smov [#allocation14]  }
  0xa4   : > { %857 = vmatpush3.bf16.msra.mxu1 %v969_v3  ;;  %849 = vmatpush3.bf16.msra.mxu0 %v970_v5  ;;  %p1091_p10 = pnand %p1090_p1, %p1571_p6  ;;  %s1093_s14 = sshll.u32 %s1194_s24, 4  ;;  %s1094_s14 = int_to_ptr.vmem [resolvable:$false] %s1093_s14 }
  0xa5   : > { %868 = vmatprep.subr.bf16.mxu1 %v1191_v0  ;;  %862 = vmatprep.subr.bf16.mxu0 %v1191_v0  ;;  %s1095_s9 = scalar_lea.vmem %s1094_s14, 256  ;;  %p1096_p4 = scmp.lt.s32.totalorder %s1490_s25, %s1094_s14 }
  0xa6   : > { %p1092_p3 = pneg %p1091_p10  ;;  %p1097_p9 = scmp.lt.s32.totalorder %s1095_s9, %s1089_s16 }
  0xa7   : > { %859 = vmatmul.mubr.msk.bf16.vlgmr.msra.gmra.mrb[0].mxu1 %vm398_vm1, %v451_v7  ;;  %851 = vmatmul.mubr.msk.bf16.vlgmr.msra.gmra.mrb[0].mxu0 %vm398_vm1, %v374_v8 }
  0xa8   : > { %870 = vmatprep.mubr.msk.bf16.mxu1 %vm1192_vm0, %v1191_v0  ;;  %864 = vmatprep.mubr.msk.bf16.mxu0 %vm1192_vm0, %v1191_v0  ;;  %p1098_p5 = por %p1097_p9, %p1096_p4 }
  0xaa   : > { %p1099_p7 = pnand %p1098_p5, %p1092_p3 }
 0x17a   : > { %v513_v11 = vpop.f32.mrb[0].mxu1  ;;  %v436_v14 = vpop.f32.mrb[0].mxu0 }
 0x17b   : > { %v514_v12 = vadd.f32 %v824_v9, %v513_v11  ;;  %v860_v13 = vpop.f32.mrb[1].mxu1  ;;  %v437_v16 = vadd.f32 %v820_v10, %v436_v14  ;;  %v852_v17 = vpop.f32.mrb[1].mxu0 }
 0x17c   : > { %v516_v15 = vpop.f32.mrb[2].mxu1  ;;  %v439_v20 = vpop.f32.mrb[2].mxu0 }
 0x17d   : > { %v519_v18 = vpack.c.bf16 %v514_v12, %v514_v12  ;;  %v861_v19 = vpop.f32.mrb[3].mxu1  ;;  %v442_v21 = vmul.f32 0.088388346, %v437_v16  ;;  %v853_v22 = vpop.f32.mrb[3].mxu0 }
 0x17f   : > { %523 = vst.msk [vmem:[#allocation4] sm:$0xf] %vm444_vm2, %v519_v18  ;;  %527 = vrot.lane.b32.xlu0 %v519_v18, %s1193_s17  ;;  %v443_v23 = vpack.c.bf16 %v442_v21, %v442_v21 }
 0x181   : > { %445 = vst.msk [vmem:[#allocation2] sm:$0xf] %vm444_vm2, %v443_v23 }
 0x186   : > { %v535_v24 = vld [vmem:[#allocation4] sm:$0xf] }
 0x187   : > { %v545_v25 = vsel %vm398_vm1, %v535_v24, 0 }
 0x188   : > { %863 = vmatpush3.bf16.xpose.msra.mxu0 %v545_v25  ;;  %v539_v26 = vld [vmem:[#allocation2] sm:$0xf] }
 0x18f   : > { %865 = vmatmul.mubr.msk.bf16.vlgmr.msra.gmra.mrb[4].mxu0 %vm398_vm1, %v539_v26 }
 0x1f1   : > { %v528_v27 = vpop.permute.xlu0 %527 }
 0x1f2   : > { %532 = vst.msk [vmem:[#allocation5] sm:$0xf] %vm444_vm2, %v528_v27 }
 0x1f9   : > { %v538_v28 = vld [vmem:[#allocation5] sm:$0xf] }
 0x1fa   : > { %v597_v29 = vsel %vm595_vm3, %v538_v28, 0 }
 0x1fb   : > { %869 = vmatpush3.bf16.msra.mxu1 %v597_v29 }
 0x262   : > { %v581_v30 = vpop.f32.mrb[4].mxu0 }
 0x263   : > { %971 = vtanh.f32 %v581_v30  ;;  %v866_v31 = vpop.f32.mrb[5].mxu0 }
 0x264   : > { %v584_v32 = vpop.f32.mrb[6].mxu0 }
 0x265   : > { %v867_v33 = vpop.f32.mrb[7].mxu0 }
 0x26d   : > { %v972_v34 = vpop.eup %971 }
 0x26e   : > { %v588_v35 = vmul.f32 0.5, %v972_v34 }
 0x270   : > { %v589_v36 = vadd.f32 0.5, %v588_v35 }
 0x272   : > { %v590_v37 = vpack.c.bf16 %v589_v36, %v589_v36 }
 0x274   : > { %871 = vmatmul.mubr.msk.bf16.vlgmr.msra.gmra.mrb[4].mxu1 %vm591_vm4, %v590_v37 }
 0x347   : > { %v633_v38 = vpop.f32.mrb[4].mxu1 }
 0x348   : > { %642 = vst.msk [vmem:[#allocation3] sm:$0xff] %vm398_vm1, %v633_v38  ;;  %v872_v39 = vpop.f32.mrb[5].mxu1 }
 0x349   : > { %v636_v40 = vpop.f32.mrb[6].mxu1 }
 0x34a   : > { %v873_v41 = vpop.f32.mrb[7].mxu1 }
 0x34f   : > { %v653_v42 = vld [vmem:[#allocation3] sm:$0xff] }
 0x350   : > { %654 = vst.msk [vmem:[%s365_s28] sm:$0xff] %vm398_vm1, %v653_v42 }
 0x351   : > { %1102 = shalt.err (!%p1099_p7)
}
 0x352   : > { %s1103_s2 = scalar_lea.hbm %s1488_s11, 128  ;;  %s1107_s18 = scalar_lea.hbm %s1544_s6, 256 }
 0x353   : > { %p1104_p13 = scmp.ne.s32.totalorder %s1488_s11, %s1103_s2  ;;  %p1108_p2 = scmp.lt.u32.totalorder %s1488_s11, %s1544_s6 }
 0x354   : > { %p1109_p12 = scmp.lt.u32.totalorder %s1107_s18, %s1103_s2  ;;  %p1111_p1 = scmp.lt.u32.totalorder %s1103_s2, %s1488_s11 }
 0x355   : > { %p1105_p8 = pnand %p1104_p13, %p1571_p6 }
 0x356   : > { %p1110_p0 = por %p1109_p12, %p1108_p2 }
 0x357   : > { %p1106_p11 = pneg %p1105_p8 }
 0x358   : > { %p1112_p10 = por %p1111_p1, %p1110_p0 }
 0x35a   : > { %p1113_p3 = pnand %p1112_p10, %p1106_p11 }
 0x35c   : > { %1116 = shalt.err (!%p1113_p3)
}
 0x35d   : > { %886 = dma.vmem_to_hbm [thread:$0]  (%p1571_p6), %s1490_s25, 128, %s1488_s11, %s656_s19  }
 0x35e PF: > { %s682_s8 = sand.u32 1, %s1163_s21   ;;  %p1572_p4 = scmp.ne.s32.totalorder %s1555_s30, 0 }
 0x35f   : > { %p1573_p9 = scmp.ge.s32.totalorder %s1183_s26, 2  ;;  %s683_s15 = scalar_lea.sflag [#allocation8], %s682_s8 }
 0x361   : > { %p903_p5 = pnand %p1573_p9, %p1572_p4 }
 0x363   : > { %1158 = dma.done.wait (!%p903_p5), %s683_s15, 128  }
 0x364   : > { %1160 = vsyncadd (!%p903_p5), %s683_s15, 4294967168  ;;  %s26_s26 = sadd.s32 1, %s1183_s26   ;;  %s1574_s10 = sld [smem:[#allocation22_spill]] }
 0x365   : > { %p23_p7 = scmp.ge.s32.totalorder %s26_s26, 4   ;;  %s1575_s24 = sld [smem:[#allocation20_spill]] }
 0x366   : > { %s1576_s25 = sld [smem:[#allocation21_spill]]  ;;  %s1577_s21 = smov %s1167_s22 }
 0x367   : > { %s1578_s22 = smov %s1171_s23  ;;  %25 = sbr.rel (!%p23_p7) target bundleno = 12 (0xc), region = 134 }
 0x36a   : > { %s1579_s23 = smov %s1574_s10 }
 0x36e   :  { %688 = vsyncpa [#allocation7], 1 }
 0x36f   :  { %690 = vsyncpa [#allocation7 + $0x1], 1 }
 0x370   :  { %691 = vsyncpa [#allocation10], 1 }
 0x371   :  { %693 = vsyncpa [#allocation10 + $0x1], 1 }
 0x372   :  { %694 = vsyncpa [#allocation13], 1 }
 0x373   :  { %695 = vsyncpa [#allocation8], 1 }
 0x374   :  { %697 = vsyncpa [#allocation8 + $0x1], 1 }

</bundles_post_ra>
